<compile_context>
chip_gen: v7x
topology: tpu7x:2x2x1
jax: 0.10.0
libtpu: 0.0.40
codegen_flags: <defaults>
</compile_context>

<pallas_src>
import functools

import jax
import jax.numpy as jnp
from jax import lax
from jax.experimental import pallas as pl
from jax.experimental.pallas import tpu as pltpu


def ffnn_kernel(x_ref, w1_ref, b1_ref, w2_ref, b2_ref, w3_ref, b3_ref, o_ref):
    # x tile in native (block_m, D) layout (one contiguous DMA per step).
    mxu_dtype = w1_ref.dtype
    xd = x_ref[...].astype(mxu_dtype)                          # (block_m, D)

    # l1 + ReLU :  h1^T = W1 @ x^T + b1  -> (H1, block_m)
    # Contract the last axes of W1 (H1, D) and x (block_m, D); Mosaic folds the
    # RHS transpose into the matmul (XLU work with plenty of slack).
    h1 = lax.dot_general(
        w1_ref[...], xd,
        dimension_numbers=(((1,), (1,)), ((), ())),
        preferred_element_type=jnp.float32) + b1_ref[...]
    h1 = jnp.maximum(h1, 0.0)                                  # f32 (H1, block_m)

    # dropout(p=0.5) -> identity in eval mode
    # TODO(synk): training-mode dropout mask via pltpu.prng_random_bits.

    # l2 + ReLU :  h2^T = W2 @ h1^T + b2  -> (H2, block_m)
    h2 = jnp.dot(w2_ref[...], h1.astype(mxu_dtype),
                 preferred_element_type=jnp.float32) + b2_ref[...]
    h2 = jnp.maximum(h2, 0.0)                                  # f32 (H2, block_m)

    # l4 head (out_features == 1): VPU multiply + sublane (XLU) reduce instead
    # of an N=1 MXU matmul; the result is lane-dense (1, block_m).
    logits = jnp.sum(h2 * w3_ref[...], axis=0, keepdims=True) + b3_ref[...]

    o_ref[...] = jax.nn.sigmoid(logits).astype(o_ref.dtype)    # lane-dense store


def _round_up(v, m):
    return ((v + m - 1) // m) * m


@functools.partial(jax.jit, static_argnames=("block_m", "use_bf16_matmul"))
def binary_ffnn_forward(x, w1, b1, w2, b2, w3, b3, *, block_m=None,
                        use_bf16_matmul=True):
    """Forward pass. Weights/biases are in PyTorch layout: W [out, in], b [out]."""
    B, D = x.shape
    H1 = w1.shape[0]
    H2 = w2.shape[0]
    O = w3.shape[0]
    assert O == 1, "binary head expected (l4 == Linear(hidden_size2, 1))"

    # Batch tile selection: full batch when small; otherwise large 128-aligned
    # tiles (capped at 2048) while guaranteeing >= 2 grid steps so v7x's two
    # TensorCores both get work.  VMEM usage is tiny at these feature sizes on
    # every generation, so bigger tiles are strictly better for step-overhead
    # amortization.
    if block_m is None:
        if B <= 512:
            block_m = B
        else:
            block_m = min(2048, _round_up(pl.cdiv(B, 2), 128))
    num_blocks = pl.cdiv(B, block_m)
    assert block_m == B or block_m % 128 == 0, (
        "block_m must span the whole batch or be a multiple of 128 "
        "(lane-dense output tiles)")

    # MXU operands in bf16 (f32 accumulation); biases / head stay f32.
    mxu_dtype = jnp.bfloat16 if use_bf16_matmul else jnp.float32
    w1c = w1.astype(mxu_dtype)                 # (H1, D)
    w2c = w2.astype(mxu_dtype)                 # (H2, H1)
    b1c = b1.reshape(H1, 1).astype(jnp.float32)
    b2c = b2.reshape(H2, 1).astype(jnp.float32)
    w3c = w3.reshape(H2, 1).astype(jnp.float32)   # (1, H2) -> column, lane-broadcast
    b3c = b3.reshape(1, 1).astype(jnp.float32)

    # Grid-invariant params: whole-array VMEM operands (single-buffered).
    vmem_whole = pl.BlockSpec(memory_space=pltpu.MemorySpace.VMEM)

    out_t = pl.pallas_call(
        ffnn_kernel,
        out_shape=jax.ShapeDtypeStruct((1, B), jnp.float32),
        grid=(num_blocks,),
        in_specs=[
            pl.BlockSpec((block_m, D), lambda i: (i, 0)),  # x tile, contiguous DMA
            vmem_whole,                                    # W1 (H1, D)
            vmem_whole,                                    # b1 (H1, 1)
            vmem_whole,                                    # W2 (H2, H1)
            vmem_whole,                                    # b2 (H2, 1)
            vmem_whole,                                    # w3 column (H2, 1)
            vmem_whole,                                    # b3 (1, 1)
        ],
        out_specs=pl.BlockSpec((1, block_m), lambda i: (0, i)),  # lane-dense output
        compiler_params=pltpu.CompilerParams(
            dimension_semantics=("parallel",),             # shards steps across v7x TCs
        ),
    )(x, w1c, b1c, w2c, b2c, w3c, b3c)

    return out_t.T                                         # (B, 1)


def init_linear(key, fan_in, fan_out):
    """PyTorch-style init: U(-1/sqrt(fan_in), 1/sqrt(fan_in)). W is [out, in]."""
    kw, kb = jax.random.split(key)
    bound = 1.0 / jnp.sqrt(jnp.float32(fan_in))
    w = jax.random.uniform(kw, (fan_out, fan_in), jnp.float32, -bound, bound)
    b = jax.random.uniform(kb, (fan_out,), jnp.float32, -bound, bound)
    return w, b


def reference_forward(x, w1, b1, w2, b2, w3, b3):
    h1 = jnp.maximum(x @ w1.T + b1, 0.0)
    h2 = jnp.maximum(h1 @ w2.T + b2, 0.0)
    return jax.nn.sigmoid(h2 @ w3.T + b3)


if __name__ == "__main__":
    batch = 16
    input_size = 32
    hidden_size1 = 64
    hidden_size2 = 32
    out_size = 1  # binary head (l4 is undefined in the original __init__)

    key = jax.random.PRNGKey(0)
    kx, k1, k2, k3 = jax.random.split(key, 4)

    x = jax.random.normal(kx, (batch, input_size), jnp.float32)
    w1, b1 = init_linear(k1, input_size, hidden_size1)
    w2, b2 = init_linear(k2, hidden_size1, hidden_size2)
    w3, b3 = init_linear(k3, hidden_size2, out_size)

    ref = reference_forward(x, w1, b1, w2, b2, w3, b3)

    # Small demo, default bf16 MXU path (single grid step, fully fused).
    out = jax.block_until_ready(binary_ffnn_forward(x, w1, b1, w2, b2, w3, b3))
    assert out.shape == (batch, out_size)
    assert jnp.allclose(out, ref, atol=2e-2, rtol=0), "mismatch vs reference (bf16)"

    # Pure-f32 MXU path for tight numerical parity with the f32 reference.
    out_f32 = jax.block_until_ready(
        binary_ffnn_forward(x, w1, b1, w2, b2, w3, b3, use_bf16_matmul=False))
    assert jnp.allclose(out_f32, ref, atol=1e-4, rtol=1e-4), "mismatch vs reference (f32)"

    # Exercise the tiled path: large batch, default block sizing (>= 2 grid
    # steps), ragged last tile handled by Pallas' implicit masking (no jnp.pad).
    xb = jax.random.normal(kx, (1000, input_size), jnp.float32)
    out_b = jax.block_until_ready(binary_ffnn_forward(xb, w1, b1, w2, b2, w3, b3))
    ref_b = reference_forward(xb, w1, b1, w2, b2, w3, b3)
    assert out_b.shape == (1000, out_size)
    assert jnp.allclose(out_b, ref_b, atol=2e-2, rtol=0), "mismatch vs reference (tiled)"

    print("KERNEL_OK")
</pallas_src>

<mosaic_0001>
module attributes {stable_mosaic.version = 11 : i64} {
  func.func @ffnn_kernel(%arg0: i32, %arg1: memref<16x32xf32, #tpu.memory_space<vmem>>, %arg2: memref<64x32xbf16, #tpu.memory_space<vmem>>, %arg3: memref<64x1xf32, #tpu.memory_space<vmem>>, %arg4: memref<32x64xbf16, #tpu.memory_space<vmem>>, %arg5: memref<32x1xf32, #tpu.memory_space<vmem>>, %arg6: memref<32x1xf32, #tpu.memory_space<vmem>>, %arg7: memref<1x1xf32, #tpu.memory_space<vmem>>, %arg8: memref<1x16xf32, #tpu.memory_space<vmem>>) attributes {dimension_semantics = [#tpu.dimension_semantics<parallel>], iteration_bounds = array<i64: 1>, scalar_prefetch = 0 : i64, scratch_operands = 0 : i64, tpu.core_type = #tpu.core_type<tc>, window_params = [{transform_indices = @transform_0, window_bounds = array<i64: 16, 32>}, {pipeline_mode = #tpu.pipeline_mode<synchronous>, transform_indices = @transform_1, window_bounds = array<i64: 64, 32>}, {pipeline_mode = #tpu.pipeline_mode<synchronous>, transform_indices = @transform_2, window_bounds = array<i64: 64, 1>}, {pipeline_mode = #tpu.pipeline_mode<synchronous>, transform_indices = @transform_3, window_bounds = array<i64: 32, 64>}, {pipeline_mode = #tpu.pipeline_mode<synchronous>, transform_indices = @transform_4, window_bounds = array<i64: 32, 1>}, {pipeline_mode = #tpu.pipeline_mode<synchronous>, transform_indices = @transform_5, window_bounds = array<i64: 32, 1>}, {pipeline_mode = #tpu.pipeline_mode<synchronous>, transform_indices = @transform_6, window_bounds = array<i64: 1, 1>}, {transform_indices = @transform_7, window_bounds = array<i64: 1, 16>}]} {
    %c0 = arith.constant 0 : index
    %c0_0 = arith.constant 0 : index
    %0 = vector.load %arg1[%c0, %c0_0] : memref<16x32xf32, #tpu.memory_space<vmem>>, vector<16x32xf32>
    %1 = arith.truncf %0 : vector<16x32xf32> to vector<16x32xbf16>
    %c0_1 = arith.constant 0 : index
    %c0_2 = arith.constant 0 : index
    %2 = vector.load %arg2[%c0_1, %c0_2] : memref<64x32xbf16, #tpu.memory_space<vmem>>, vector<64x32xbf16>
    %cst = arith.constant dense<0.000000e+00> : vector<64x16xf32>
    %3 = tpu.matmul %2, %1, %cst {dimension_numbers = #tpu.dot_dimension_numbers<[1], [1], [0], [0], [0, 0, 1, 0], [], []>} : vector<64x32xbf16>, vector<16x32xbf16>, vector<64x16xf32> -> vector<64x16xf32>
    %c0_3 = arith.constant 0 : index
    %c0_4 = arith.constant 0 : index
    %4 = vector.load %arg3[%c0_3, %c0_4] : memref<64x1xf32, #tpu.memory_space<vmem>>, vector<64x1xf32>
    %5 = vector.broadcast %4 : vector<64x1xf32> to vector<64x16xf32>
    %6 = arith.addf %3, %5 : vector<64x16xf32>
    %cst_5 = arith.constant 0.000000e+00 : f32
    %7 = vector.broadcast %cst_5 : f32 to vector<64x16xf32>
    %8 = arith.maximumf %6, %7 : vector<64x16xf32>
    %c0_6 = arith.constant 0 : index
    %c0_7 = arith.constant 0 : index
    %9 = vector.load %arg4[%c0_6, %c0_7] : memref<32x64xbf16, #tpu.memory_space<vmem>>, vector<32x64xbf16>
    %10 = arith.truncf %8 : vector<64x16xf32> to vector<64x16xbf16>
    %cst_8 = arith.constant dense<0.000000e+00> : vector<32x16xf32>
    %11 = tpu.matmul %9, %10, %cst_8 {dimension_numbers = #tpu.dot_dimension_numbers<[1], [0], [0], [1], [0, 0, 1, 1], [], []>} : vector<32x64xbf16>, vector<64x16xbf16>, vector<32x16xf32> -> vector<32x16xf32>
    %c0_9 = arith.constant 0 : index
    %c0_10 = arith.constant 0 : index
    %12 = vector.load %arg5[%c0_9, %c0_10] : memref<32x1xf32, #tpu.memory_space<vmem>>, vector<32x1xf32>
    %13 = vector.broadcast %12 : vector<32x1xf32> to vector<32x16xf32>
    %14 = arith.addf %11, %13 : vector<32x16xf32>
    %cst_11 = arith.constant 0.000000e+00 : f32
    %15 = vector.broadcast %cst_11 : f32 to vector<32x16xf32>
    %16 = arith.maximumf %14, %15 : vector<32x16xf32>
    %c0_12 = arith.constant 0 : index
    %c0_13 = arith.constant 0 : index
    %17 = vector.load %arg6[%c0_12, %c0_13] : memref<32x1xf32, #tpu.memory_space<vmem>>, vector<32x1xf32>
    %18 = vector.broadcast %17 : vector<32x1xf32> to vector<32x16xf32>
    %19 = arith.mulf %16, %18 : vector<32x16xf32>
    %cst_14 = arith.constant dense<0.000000e+00> : vector<16xf32>
    %20 = vector.multi_reduction <add>, %19, %cst_14 [0] : vector<32x16xf32> to vector<16xf32>
    %21 = vector.shape_cast %20 : vector<16xf32> to vector<1x16xf32>
    %c0_15 = arith.constant 0 : index
    %c0_16 = arith.constant 0 : index
    %22 = vector.load %arg7[%c0_15, %c0_16] : memref<1x1xf32, #tpu.memory_space<vmem>>, vector<1x1xf32>
    %23 = vector.broadcast %22 : vector<1x1xf32> to vector<1x16xf32>
    %24 = arith.addf %21, %23 : vector<1x16xf32>
    %25 = arith.negf %24 : vector<1x16xf32>
    %26 = math.exp %25 : vector<1x16xf32>
    %cst_17 = arith.constant 1.000000e+00 : f32
    %27 = vector.broadcast %cst_17 : f32 to vector<1x16xf32>
    %28 = arith.addf %27, %26 : vector<1x16xf32>
    %29 = arith.divf %27, %28 : vector<1x16xf32>
    %c0_18 = arith.constant 0 : index
    %c0_19 = arith.constant 0 : index
    %30 = vector.load %arg8[%c0_18, %c0_19] : memref<1x16xf32, #tpu.memory_space<vmem>>, vector<1x16xf32>
    tpu.vector_store %arg8[%c0_18, %c0_19], %29 {strides = array<i32>} : memref<1x16xf32, #tpu.memory_space<vmem>>, vector<1x16xf32>,
    return
  }
  func.func @transform_0(%arg0: i32) -> (i32, i32) {
    %c0_i32 = arith.constant 0 : i32
    %c0_i32_0 = arith.constant 0 : i32
    return %arg0, %c0_i32 : i32, i32
  }
  func.func @transform_1(%arg0: i32) -> (i32, i32) {
    %c0_i32 = arith.constant 0 : i32
    %c0_i32_0 = arith.constant 0 : i32
    %c0_i32_1 = arith.constant 0 : i32
    return %c0_i32, %c0_i32_0 : i32, i32
  }
  func.func @transform_2(%arg0: i32) -> (i32, i32) {
    %c0_i32 = arith.constant 0 : i32
    %c0_i32_0 = arith.constant 0 : i32
    %c0_i32_1 = arith.constant 0 : i32
    return %c0_i32, %c0_i32_0 : i32, i32
  }
  func.func @transform_3(%arg0: i32) -> (i32, i32) {
    %c0_i32 = arith.constant 0 : i32
    %c0_i32_0 = arith.constant 0 : i32
    %c0_i32_1 = arith.constant 0 : i32
    return %c0_i32, %c0_i32_0 : i32, i32
  }
  func.func @transform_4(%arg0: i32) -> (i32, i32) {
    %c0_i32 = arith.constant 0 : i32
    %c0_i32_0 = arith.constant 0 : i32
    %c0_i32_1 = arith.constant 0 : i32
    return %c0_i32, %c0_i32_0 : i32, i32
  }
  func.func @transform_5(%arg0: i32) -> (i32, i32) {
    %c0_i32 = arith.constant 0 : i32
    %c0_i32_0 = arith.constant 0 : i32
    %c0_i32_1 = arith.constant 0 : i32
    return %c0_i32, %c0_i32_0 : i32, i32
  }
  func.func @transform_6(%arg0: i32) -> (i32, i32) {
    %c0_i32 = arith.constant 0 : i32
    %c0_i32_0 = arith.constant 0 : i32
    %c0_i32_1 = arith.constant 0 : i32
    return %c0_i32, %c0_i32_0 : i32, i32
  }
  func.func @transform_7(%arg0: i32) -> (i32, i32) {
    %c0_i32 = arith.constant 0 : i32
    %c0_i32_0 = arith.constant 0 : i32
    return %c0_i32, %arg0 : i32, i32
  }
}

</mosaic_0001>

<bundles_post_ra>
// kernel: binary_ffnn_forward.1
= control target key start
LH: loop header
LB: loop body
LE: loop exit
PB: predicated region body
PF: predicated region fallthrough
CT: control target
= control target key end

     0   :  { %s597_s0 = inlined_call_operand.vmem [shape: f32[16,32], index: 0, kind: input, shape index: {}]   ;;  %s598_s1 = inlined_call_operand.vmem [shape: bf16[64,32], index: 1, kind: input, shape index: {}]   ;;  %s599_s2 = inlined_call_operand.vmem [shape: f32[64,1], index: 2, kind: input, shape index: {}]   ;;  %s600_s3 = inlined_call_operand.vmem [shape: bf16[32,64], index: 3, kind: input, shape index: {}]   ;;  %s601_s4 = inlined_call_operand.vmem [shape: f32[32,1], index: 4, kind: input, shape index: {}]   ;;  %s602_s5 = inlined_call_operand.vmem [shape: f32[32,1], index: 5, kind: input, shape index: {}]   ;;  %s603_s6 = inlined_call_operand.<no memory space> [shape: f32[1,1], index: 6, kind: input, shape index: {}]   ;;  %s604_s7 = inlined_call_operand.hbm [shape: f32[1,16], index: 7, kind: output, shape index: {}]  }
   0x1   :  { %v12_v0 = vstv %s603_s6 }
   0x2   :  { %13 = vst [vmem:[#allocation2] sm:$0x1] %v12_v0 }
   0x3   :  { %v30_v1 = vld [vmem:[%s597_s0] sm:$0xff]  ;;  %v31_v2 = vld [vmem:[%s597_s0 + $0x8] sm:$0xff]  ;;  %vm109_vm0 = vcmask 261120   ;;  %v460_v5 = vmov 0   ;;  %v43_v8 = vld [vmem:[%s599_s2 + $0x10] sm:$0xff] }
   0x4   :  { %v32_v3 = vpack.c.bf16 %v31_v2, %v30_v1  ;;  %v426_v4 = vld [vmem:[%s598_s1] sm:$0xff]   ;;  %424 = vset.pattern.permute.xlu0 %v460_v5  ;;  %425 = vset.pattern.permute.xlu1 %v460_v5  ;;  %v42_v9 = vld [vmem:[%s599_s2 + $0x8] sm:$0xff]  ;;  %v44_v11 = vld [vmem:[%s599_s2 + $0x18] sm:$0xff] }
   0x5   :  { %401 = vmatprep.mubr.msk.bf16.mxu0 %vm109_vm0, %v426_v4  ;;  %v41_v7 = vld [vmem:[%s599_s2] sm:$0xff]  ;;  %61 = vperm.xlu1 %425, %v43_v8   ;;  %v427_v10 = vld [vmem:[%s598_s1 + $0x8] sm:$0xff]   ;;  %v428_v12 = vld [vmem:[%s598_s1 + $0x10] sm:$0xff]  }
   0x6   :  { %421 = vmatprep.subr.msk.bf16.mxu0 %vm109_vm0, %v32_v3  ;;  %v123_v6 = vsel %vm109_vm0, %v32_v3, 0  ;;  %51 = vperm.xlu0 %424, %v41_v7   ;;  %v45_v13 = vld [vmem:[%s599_s2 + $0x20] sm:$0xff]  ;;  %v46_v14 = vld [vmem:[%s599_s2 + $0x28] sm:$0xff] }
   0x7   :  { %400 = vmatpush3.bf16.xpose.msra.mxu0 %v123_v6 }
   0x9   :  { %66 = vperm.xlu1 %425, %v44_v11  }
   0xa   :  { %56 = vperm.xlu0 %424, %v42_v9  }
   0xe   :  { %402 = vmatmul.mubr.msk.bf16.vlgmr.msra.gmra.mrb[0].mxu0 %vm109_vm0, %v427_v10 }
   0xf   :  { %14 = vsyncpa [#allocation4], 0  ;;  %405 = vmatprep.mubr.msk.bf16.mxu0 %vm109_vm0, %v428_v12  ;;  %71 = vperm.xlu0 %424, %v45_v13   ;;  %v47_v15 = vld [vmem:[%s599_s2 + $0x30] sm:$0xff]  ;;  %v429_v16 = vld [vmem:[%s598_s1 + $0x18] sm:$0xff]   ;;  %vm240_vm1 = vcmask 523264   ;;  %vm328_vm2 = vcmask 130048  }
  0x10   :  { %76 = vperm.xlu1 %425, %v46_v14   ;;  %v48_v17 = vld [vmem:[%s599_s2 + $0x38] sm:$0xff]  ;;  %v206_v18 = vld [vmem:[%s601_s4] sm:$0xff]  ;;  %v207_v19 = vld [vmem:[%s601_s4 + $0x8] sm:$0xff]  ;;  %vm359_vm3 = vcmask 122880  }
  0x11   :  { %v208_v20 = vld [vmem:[%s601_s4 + $0x10] sm:$0xff]  ;;  %v209_v21 = vld [vmem:[%s601_s4 + $0x18] sm:$0xff]  ;;  %v300_v22 = vld [vmem:[%s602_s5] sm:$0xff] }
  0x12   :  { %v301_v23 = vld [vmem:[%s602_s5 + $0x8] sm:$0xff]  ;;  %v302_v24 = vld [vmem:[%s602_s5 + $0x10] sm:$0xff]  ;;  %v303_v25 = vld [vmem:[%s602_s5 + $0x18] sm:$0xff] }
  0x13   :  { %81 = vperm.xlu0 %424, %v47_v15   ;;  %v342_v26 = vld [vmem:[#allocation2] sm:$0x1]  ;;  %v431_v0 = vld [vmem:[%s600_s3 + $0x8] sm:$0xff]  }
  0x14   :  { %86 = vperm.xlu1 %425, %v48_v17   ;;  %v430_v27 = vld [vmem:[%s600_s3] sm:$0xff]   ;;  %s461_s3 = smov [#allocation3]  }
  0x15   :  { %417 = vmatprep.mubr.msk.bf16.mxu1 %vm240_vm1, %v430_v27  ;;  %s367_s20 = sshll.u32 %s461_s3, 4  ;;  %s368_s20 = int_to_ptr.vmem [resolvable:$true] %s367_s20 }
  0x16   :  { %406 = vmatmul.mubr.msk.bf16.gmra.mrb[4].mxu0 %vm109_vm0, %v429_v16  ;;  %s436_s21 = scalar_lea.vmem %s368_s20, 16  ;;  %s440_s22 = scalar_lea.vmem %s368_s20, 32 }
  0x17   :  { %212 = vperm.xlu0 %424, %v206_v18   ;;  %p437_p0 = scmp.ne.s32.totalorder %s368_s20, %s436_s21  ;;  %p441_p1 = scmp.lt.s32.totalorder %s368_s20, %s368_s20 }
  0x18   :  { %217 = vperm.xlu1 %425, %v207_v19   ;;  %p442_p2 = scmp.lt.s32.totalorder %s440_s22, %s436_s21 }
  0x1a   :  { %p443_p3 = por %p442_p2, %p441_p1 }
  0x1b   :  { %222 = vperm.xlu0 %424, %v208_v20  }
  0x1c   :  { %227 = vperm.xlu1 %425, %v209_v21   ;;  %p444_p4 = pnand %p443_p3, %p437_p0 }
  0x1f   :  { %306 = vperm.xlu0 %424, %v300_v22  }
  0x20   :  { %311 = vperm.xlu1 %425, %v301_v23  }
  0x23   :  { %316 = vperm.xlu0 %424, %v302_v24  }
  0x24   :  { %321 = vperm.xlu1 %425, %v303_v25  }
  0x27   :  { %345 = vperm.xlu0 %424, %v342_v26  }
  0x84   :  { %v62_v29 = vpop.permute.xlu1 %61 }
  0x85   :  { %v52_v28 = vpop.permute.xlu0 %51 }
  0x88   :  { %v67_v31 = vpop.permute.xlu1 %66 }
  0x89   :  { %v57_v30 = vpop.permute.xlu0 %56 }
  0x8e   :  { %v72_v35 = vpop.permute.xlu0 %71 }
  0x8f   :  { %v77_v40 = vpop.permute.xlu1 %76 }
  0x92   :  { %v82_v47 = vpop.permute.xlu0 %81 }
  0x93   :  { %v87_v52 = vpop.permute.xlu1 %86 }
  0x96   :  { %v213_v1 = vpop.permute.xlu0 %212 }
  0x97   :  { %v218_v2 = vpop.permute.xlu1 %217 }
  0x9a   :  { %v223_v3 = vpop.permute.xlu0 %222 }
  0x9b   :  { %v228_v4 = vpop.permute.xlu1 %227 }
  0x9e   :  { %v307_v6 = vpop.permute.xlu0 %306 }
  0x9f   :  { %v312_v11 = vpop.permute.xlu1 %311 }
  0xa2   :  { %v317_v20 = vpop.permute.xlu0 %316 }
  0xa3   :  { %v322_v23 = vpop.permute.xlu1 %321 }
  0xe1   :  { %v403_v32 = vpop.f32.mrb[0].mxu0 }
  0xe2   :  { %v168_v33 = vadd.f32 %v403_v32, %v62_v29  ;;  %v159_v34 = vpop.f32.mrb[1].mxu0 }
  0xe3   :  { %v160_v36 = vadd.f32 %v159_v34, %v52_v28  ;;  %v404_v37 = vpop.f32.mrb[2].mxu0 }
  0xe4   :  { %v171_v38 = vadd.f32 %v404_v37, %v67_v31  ;;  %v162_v39 = vpop.f32.mrb[3].mxu0  ;;  %v192_v42 = vmax.f32 %v168_v33, 0.0  ;;  %v348_v31 = vlaneseq }
  0xe5   :  { %v163_v41 = vadd.f32 %v162_v39, %v57_v30  ;;  %v190_v44 = vmax.f32 %v160_v36, 0.0  ;;  %v346_v39 = vpop.permute.xlu0 %345 }
  0xe6   :  { %v193_v43 = vmax.f32 %v171_v38, 0.0  ;;  %v349_v34 = vshrl.u32 %v348_v31, 7 }
  0xe7   :  { %v191_v45 = vmax.f32 %v163_v41, 0.0 }
  0xe8   :  { %v203_v46 = vpack.c.bf16 %v193_v43, %v192_v42  ;;  %v350_v37 = vsub.s32 0, %v349_v34 }
  0xe9   :  { %v407_v48 = vpop.f32.mrb[4].mxu0  ;;  %v202_v49 = vpack.c.bf16 %v191_v45, %v190_v44 }
  0xea   :  { %v184_v50 = vadd.f32 %v407_v48, %v82_v47  ;;  %v175_v51 = vpop.f32.mrb[5].mxu0  ;;  %v351_v41 = vrot.slane %v346_v39, %v350_v37 }
  0xeb   :  { %v176_v53 = vadd.f32 %v175_v51, %v72_v35  ;;  %v408_v54 = vpop.f32.mrb[6].mxu0  ;;  %409 = vmatprep.subr.bf16.mxu1 %v202_v49 }
  0xec   :  { %v187_v55 = vadd.f32 %v408_v54, %v87_v52  ;;  %v178_v56 = vpop.f32.mrb[7].mxu0  ;;  %410 = vmatpush3.bf16.msra.mxu1 %v202_v49  ;;  %v196_v58 = vmax.f32 %v184_v50, 0.0 }
  0xed   :  { %v179_v57 = vadd.f32 %v178_v56, %v77_v40  ;;  %411 = vmatprep.subr.bf16.mxu1 %v203_v46  ;;  %v194_v60 = vmax.f32 %v176_v53, 0.0 }
  0xee   :  { %v197_v59 = vmax.f32 %v187_v55, 0.0 }
  0xef   :  { %v195_v61 = vmax.f32 %v179_v57, 0.0 }
  0xf0   :  { %v205_v62 = vpack.c.bf16 %v197_v59, %v196_v58  ;;  %412 = vmatpush3.bf16.msra.mxu1 %v203_v46 }
  0xf1   :  { %v204_v63 = vpack.c.bf16 %v195_v61, %v194_v60 }
  0xf3   :  { %413 = vmatprep.subr.bf16.mxu1 %v204_v63 }
  0xf4   :  { %414 = vmatpush3.bf16.msra.mxu1 %v204_v63 }
  0xf5   :  { %415 = vmatprep.subr.bf16.mxu1 %v205_v62 }
  0xf8   :  { %416 = vmatpush3.bf16.msra.mxu1 %v205_v62 }
  0xfb   :  { %418 = vmatmul.mubr.msk.bf16.vlgmr.msra.gmra.mrb[0].mxu1 %vm240_vm1, %v431_v0 }
 0x1ce   :  { %v419_v5 = vpop.f32.mrb[0].mxu1 }
 0x1cf   :  { %v290_v7 = vadd.f32 %v419_v5, %v223_v3  ;;  %v281_v8 = vpop.f32.mrb[1].mxu1 }
 0x1d0   :  { %v282_v9 = vadd.f32 %v281_v8, %v213_v1  ;;  %v420_v10 = vpop.f32.mrb[2].mxu1 }
 0x1d1   :  { %v293_v12 = vadd.f32 %v420_v10, %v228_v4  ;;  %v284_v13 = vpop.f32.mrb[3].mxu1  ;;  %v298_v14 = vmax.f32 %v290_v7, 0.0 }
 0x1d2   :  { %v296_v15 = vmax.f32 %v282_v9, 0.0  ;;  %v285_v16 = vadd.f32 %v284_v13, %v218_v2 }
 0x1d3   :  { %v299_v18 = vmax.f32 %v293_v12, 0.0  ;;  %v326_v21 = vmul.f32 %v317_v20, %v298_v14 }
 0x1d4   :  { %v324_v17 = vmul.f32 %v307_v6, %v296_v15  ;;  %v297_v19 = vmax.f32 %v285_v16, 0.0 }
 0x1d5   :  { %v327_v25 = vmul.f32 %v322_v23, %v299_v18  ;;  %v332_v28 = vsel %vm328_vm2, %v326_v21, 0.0 }
 0x1d6   :  { %v325_v22 = vmul.f32 %v312_v11, %v297_v19  ;;  %v329_v24 = vsel %vm328_vm2, %v324_v17, 0.0 }
 0x1d7   :  { %v334_v30 = vsel %vm328_vm2, %v327_v25, 0.0 }
 0x1d8   :  { %v330_v26 = vsel %vm328_vm2, %v325_v22, 0.0 }
 0x1d9   :  { %v331_v27 = vadd.f32 %v330_v26, %v329_v24 }
 0x1db   :  { %v333_v29 = vadd.f32 %v332_v28, %v331_v27 }
 0x1dd   :  { %v335_v32 = vadd.f32 %v334_v30, %v333_v29 }
 0x1df   :  { %v336_v33 = vrot.slane %v335_v32, 4 }
 0x1e1   :  { %v337_v35 = vadd.f32 %v336_v33, %v335_v32 }
 0x1e3   :  { %v338_v36 = vrot.slane %v337_v35, 2 }
 0x1e5   :  { %v339_v38 = vadd.f32 %v338_v36, %v337_v35 }
 0x1e7   :  { %v340_v40 = vrot.slane %v339_v38, 1 }
 0x1e9   :  { %v341_v42 = vadd.f32 %v340_v40, %v339_v38 }
 0x1eb   :  { %v352_v43 = vadd.f32 %v351_v41, %v341_v42 }
 0x1ed   :  { %v387_v44 = vmul.f32 -1.442695, %v352_v43 }
 0x1ef   :  { %432 = vpow2.f32 %v387_v44 }
 0x1f9   :  { %v433_v45 = vpop.eup %432 }
 0x1fa   :  { %v356_v46 = vadd.f32 1.0, %v433_v45 }
 0x1fc   :  { %434 = vrcp.f32 %v356_v46 }
 0x206   :  { %v435_v47 = vpop.eup %434 }
 0x207   :  { %360 = vst.msk [vmem:[#allocation3] sm:$0x1] %vm359_vm3, %v435_v47 }
 0x208   :  { %447 = shalt.err (!%p444_p4)
}
 0x209   :  { %s448_s25 = scalar_lea.hbm %s604_s7, 16 }
 0x20a   :  { %p449_p5 = scmp.ne.s32.totalorder %s604_s7, %s448_s25  ;;  %p452_p6 = scmp.lt.u32.totalorder %s448_s25, %s604_s7 }
 0x20c   :  { %p454_p7 = pnand %p452_p6, %p449_p5 }
 0x20e   :  { %457 = shalt.err (!%p454_p7)
}
 0x20f   :  { %370 = dma.vmem_to_hbm [thread:$0]  %s368_s20, 16, %s604_s7, [#allocation4]  }
 0x210   :  { %458 = dma.done.wait [#allocation4], 16  }
 0x211   :  { %459 = vsyncadd [#allocation4], 4294967280 }
 0x212   :  { %374 = vsyncpa [#allocation4], 1 }

</bundles_post_ra>
